<compile_context>
chip_gen: v7x
topology: tpu7x:2x2x1
jax: 0.10.0
libtpu: 0.0.40
codegen_flags: <defaults>
</compile_context>

<pallas_src>
import functools

import jax
import jax.numpy as jnp
from jax.experimental import pallas as pl
from jax.experimental.pallas import tpu as pltpu

# ---- model hyperparameters (module globals in the original script) ----
FULL_CON_LAYER1_UNIT = 128
FULL_CON_LAYER2_UNIT = 128   # must equal layer1 unit for the forward to type-check
INPUT_DIM = 32
OUTPUT_DIM = 8

_LANE = 128   # TPU lane width: the narrow OUTPUT dim is zero-padded up to this.
_SUB = 32     # batch-tile alignment (covers f32 / bf16 sublane packing).


def _round_up(n, m):
    return -(-n // m) * m


def _pad_to(arr, shape):
    pads = [(0, t - s) for s, t in zip(arr.shape, shape)]
    if all(p == (0, 0) for p in pads):
        return arr
    return jnp.pad(arr, pads)


def _bsnet_kernel(x_ref,
                  w1_ref, b1_ref,
                  w2_ref, b2_ref,
                  w3_ref, b3_ref,
                  w4_ref, b4_ref,
                  w5_ref, b5_ref,
                  w6_ref, b6_ref,
                  o_ref):
    """Whole MLP fused in one kernel invocation (per batch tile)."""
    compute_dtype = w1_ref.dtype

    def dense(h, w_ref, b_ref):
        # MXU matmul in the (possibly bf16) compute dtype, f32 accumulation,
        # f32 bias add.
        y = jnp.dot(h, w_ref[...], preferred_element_type=jnp.float32)
        return y + b_ref[...]

    # x arrives in f32; cast to the MXU compute dtype in-kernel (free on VALU).
    h = x_ref[...].astype(compute_dtype)
    for w_ref, b_ref in ((w1_ref, b1_ref), (w2_ref, b2_ref), (w3_ref, b3_ref),
                         (w4_ref, b4_ref), (w5_ref, b5_ref)):
        # ReLU in f32, then downcast so the next matmul runs at native MXU
        # rate.  Dropout is eval-mode identity.
        h = jnp.maximum(dense(h, w_ref, b_ref), 0.0).astype(compute_dtype)
    o_ref[...] = dense(h, w6_ref, b6_ref).astype(o_ref.dtype)


def _pick_tile_b(batch, max_tile=4096):
    """Per-generation batch tile: 1 tile on single-TC chips, >=2 on v7x."""
    b_aligned = _round_up(batch, _SUB)
    try:
        kind = jax.devices()[0].device_kind.lower()
        two_tensorcores = ("v7" in kind) or ("7x" in kind) or ("tpu7" in kind)
    except Exception:  # pragma: no cover - be robust on exotic backends
        two_tensorcores = False
    n_tiles = 2 if (two_tensorcores and b_aligned >= 2 * _SUB) else 1
    tile = _round_up(-(-b_aligned // n_tiles), _SUB)
    return max(_SUB, min(tile, max_tile))


@functools.partial(jax.jit, static_argnames=("tile_b", "compute_dtype"))
def _bsnet_forward_impl(x, params, *, tile_b, compute_dtype):
    B, in_dim = x.shape
    h1 = params["w1"].shape[1]
    h2 = params["w6"].shape[0]
    out_dim = params["w6"].shape[1]

    out_pad = _round_up(max(out_dim, _LANE), _LANE)   # lane-dense output stores
    b_pad = _round_up(B, tile_b)
    grid = (b_pad // tile_b,)

    # Batch-only padding (no feature-dim pad, no wrapper dtype cast).
    x_p = _pad_to(x, (b_pad, in_dim))

    padded = {
        "w1": params["w1"].astype(compute_dtype),
        "b1": params["b1"].astype(jnp.float32),
        "w6": _pad_to(params["w6"], (h2, out_pad)).astype(compute_dtype),
        "b6": _pad_to(params["b6"], (1, out_pad)).astype(jnp.float32),
    }
    for idx in range(2, 6):
        padded[f"w{idx}"] = params[f"w{idx}"].astype(compute_dtype)
        padded[f"b{idx}"] = params[f"b{idx}"].astype(jnp.float32)

    weight_args = []
    # x tile: last dim (32) equals the full array dim -> legal narrow block.
    in_specs = [pl.BlockSpec((tile_b, in_dim), lambda i: (i, 0))]
    for name in ("w1", "b1", "w2", "b2", "w3", "b3",
                 "w4", "b4", "w5", "b5", "w6", "b6"):
        p = padded[name]
        weight_args.append(p)
        # Full (untiled) block, constant block index -> DMA'd once and kept
        # VMEM-resident across grid steps.  ndim bound NOW (no late binding).
        in_specs.append(pl.BlockSpec(p.shape, lambda i, nd=p.ndim: (0,) * nd))

    out_dtype = jnp.dtype(compute_dtype)

    # Advisory cost: real input dim, actual HBM streams.
    flops = 2 * b_pad * (in_dim * h1 + 4 * h1 * h2 + h2 * out_pad)
    bytes_accessed = (x_p.size * x_p.dtype.itemsize
                      + sum(p.size * p.dtype.itemsize for p in weight_args)
                      + b_pad * out_pad * out_dtype.itemsize)

    out_padded = pl.pallas_call(
        _bsnet_kernel,
        out_shape=jax.ShapeDtypeStruct((b_pad, out_pad), out_dtype),
        grid_spec=pltpu.PrefetchScalarGridSpec(
            num_scalar_prefetch=0,
            grid=grid,
            in_specs=in_specs,
            out_specs=pl.BlockSpec((tile_b, out_pad), lambda i: (i, 0)),
        ),
        compiler_params=pltpu.CompilerParams(
            dimension_semantics=("parallel",)),
        cost_estimate=pl.CostEstimate(
            flops=flops, transcendentals=0, bytes_accessed=bytes_accessed),
    )(x_p, *weight_args)

    # Slice back to the real batch / output width; the upcast touches only
    # B * out_dim elements.
    return out_padded[:B, :out_dim].astype(jnp.float32)


def bsnet_forward(x, params, *, tile_b=None, compute_dtype=jnp.bfloat16):
    """x: [B, input_dim] float32. params: dict of (w, b) per layer, w = [in, out]."""
    B = x.shape[0]
    if tile_b is None:
        tile_b = _pick_tile_b(B)
    # Clamp so padded rows never balloon far past the real batch.
    tile_b = max(_SUB, min(int(tile_b), _round_up(B, 256)))
    tile_b = _round_up(tile_b, _SUB)
    return _bsnet_forward_impl(x, params, tile_b=tile_b, compute_dtype=compute_dtype)


def _xavier_uniform(key, fan_in, fan_out):
    # torch.nn.init.xavier_uniform_ on a [out, in] Linear weight; we store [in, out].
    limit = (6.0 / (fan_in + fan_out)) ** 0.5
    return jax.random.uniform(key, (fan_in, fan_out), jnp.float32, -limit, limit)


def init_bsnet_params(key, input_dim, output_dim):
    h1 = FULL_CON_LAYER1_UNIT
    h2 = FULL_CON_LAYER2_UNIT
    dims = [(input_dim, h1), (h1, h2), (h1, h2), (h1, h2), (h1, h2), (h2, output_dim)]
    params = {}
    keys = jax.random.split(key, len(dims))
    for idx, ((fi, fo), k) in enumerate(zip(dims, keys), start=1):
        params[f"w{idx}"] = _xavier_uniform(k, fi, fo)
        params[f"b{idx}"] = jnp.zeros((1, fo), jnp.float32)  # constant_(bias, 0)
    return params


def bsnet_reference(x, params, compute_dtype=jnp.float32):
    """Pure-JAX reference that mirrors the kernel's per-layer dtype handling."""
    h = x.astype(compute_dtype)
    for idx in range(1, 7):
        w = params[f"w{idx}"].astype(compute_dtype)
        y = jnp.dot(h, w, preferred_element_type=jnp.float32) \
            + params[f"b{idx}"].astype(jnp.float32)
        if idx < 6:
            h = jnp.maximum(y, 0.0).astype(compute_dtype)
        else:
            h = y.astype(compute_dtype)   # kernel stores the final layer in compute dtype
    return h.astype(jnp.float32)


if __name__ == "__main__":
    key = jax.random.PRNGKey(0)
    k_param, k_x = jax.random.split(key)

    params = init_bsnet_params(k_param, INPUT_DIM, OUTPUT_DIM)

    # Small batch; the tile picker handles single- vs dual-TensorCore chips.
    B = 64
    x = jax.random.normal(k_x, (B, INPUT_DIM), jnp.float32)

    # Fast path: bf16 matmul operands, f32 accumulation, bf16 writeback.
    out = jax.block_until_ready(bsnet_forward(x, params, compute_dtype=jnp.bfloat16))
    assert out.shape == (B, OUTPUT_DIM)

    ref_bf16 = bsnet_reference(x, params, compute_dtype=jnp.bfloat16)
    ref_f32 = bsnet_reference(x, params, compute_dtype=jnp.float32)
    assert jnp.allclose(out, ref_bf16, atol=1e-2, rtol=1e-2), "bf16 path mismatch"
    assert jnp.allclose(out, ref_f32, atol=1.5e-1, rtol=1.5e-1), "bf16 path drifted from f32"

    # Full-precision path through the same kernel.
    out_f32 = jax.block_until_ready(bsnet_forward(x, params, compute_dtype=jnp.float32))
    assert out_f32.shape == (B, OUTPUT_DIM)
    assert jnp.allclose(out_f32, ref_f32, atol=2e-2, rtol=2e-2), "f32 path mismatch"

    print("KERNEL_OK")
</pallas_src>

<mosaic_0001>
module attributes {stable_mosaic.version = 11 : i64} {
  func.func @_bsnet_kernel(%arg0: i32, %arg1: memref<64x32xf32, #tpu.memory_space<vmem>>, %arg2: memref<32x128xbf16, #tpu.memory_space<vmem>>, %arg3: memref<1x128xf32, #tpu.memory_space<vmem>>, %arg4: memref<128x128xbf16, #tpu.memory_space<vmem>>, %arg5: memref<1x128xf32, #tpu.memory_space<vmem>>, %arg6: memref<128x128xbf16, #tpu.memory_space<vmem>>, %arg7: memref<1x128xf32, #tpu.memory_space<vmem>>, %arg8: memref<128x128xbf16, #tpu.memory_space<vmem>>, %arg9: memref<1x128xf32, #tpu.memory_space<vmem>>, %arg10: memref<128x128xbf16, #tpu.memory_space<vmem>>, %arg11: memref<1x128xf32, #tpu.memory_space<vmem>>, %arg12: memref<128x128xbf16, #tpu.memory_space<vmem>>, %arg13: memref<1x128xf32, #tpu.memory_space<vmem>>, %arg14: memref<64x128xbf16, #tpu.memory_space<vmem>>) attributes {dimension_semantics = [#tpu.dimension_semantics<parallel>], iteration_bounds = array<i64: 1>, scalar_prefetch = 0 : i64, scratch_operands = 0 : i64, tpu.core_type = #tpu.core_type<tc>, window_params = [{transform_indices = @transform_0, window_bounds = array<i64: 64, 32>}, {pipeline_mode = #tpu.pipeline_mode<synchronous>, transform_indices = @transform_1, window_bounds = array<i64: 32, 128>}, {pipeline_mode = #tpu.pipeline_mode<synchronous>, transform_indices = @transform_2, window_bounds = array<i64: 1, 128>}, {pipeline_mode = #tpu.pipeline_mode<synchronous>, transform_indices = @transform_3, window_bounds = array<i64: 128, 128>}, {pipeline_mode = #tpu.pipeline_mode<synchronous>, transform_indices = @transform_4, window_bounds = array<i64: 1, 128>}, {pipeline_mode = #tpu.pipeline_mode<synchronous>, transform_indices = @transform_5, window_bounds = array<i64: 128, 128>}, {pipeline_mode = #tpu.pipeline_mode<synchronous>, transform_indices = @transform_6, window_bounds = array<i64: 1, 128>}, {pipeline_mode = #tpu.pipeline_mode<synchronous>, transform_indices = @transform_7, window_bounds = array<i64: 128, 128>}, {pipeline_mode = #tpu.pipeline_mode<synchronous>, transform_indices = @transform_8, window_bounds = array<i64: 1, 128>}, {pipeline_mode = #tpu.pipeline_mode<synchronous>, transform_indices = @transform_9, window_bounds = array<i64: 128, 128>}, {pipeline_mode = #tpu.pipeline_mode<synchronous>, transform_indices = @transform_10, window_bounds = array<i64: 1, 128>}, {pipeline_mode = #tpu.pipeline_mode<synchronous>, transform_indices = @transform_11, window_bounds = array<i64: 128, 128>}, {pipeline_mode = #tpu.pipeline_mode<synchronous>, transform_indices = @transform_12, window_bounds = array<i64: 1, 128>}, {transform_indices = @transform_13, window_bounds = array<i64: 64, 128>}]} {
    %c0 = arith.constant 0 : index
    %c0_0 = arith.constant 0 : index
    %0 = vector.load %arg1[%c0, %c0_0] : memref<64x32xf32, #tpu.memory_space<vmem>>, vector<64x32xf32>
    %1 = arith.truncf %0 : vector<64x32xf32> to vector<64x32xbf16>
    %c0_1 = arith.constant 0 : index
    %c0_2 = arith.constant 0 : index
    %2 = vector.load %arg2[%c0_1, %c0_2] : memref<32x128xbf16, #tpu.memory_space<vmem>>, vector<32x128xbf16>
    %cst = arith.constant dense<0.000000e+00> : vector<64x128xf32>
    %3 = tpu.matmul %1, %2, %cst {dimension_numbers = #tpu.dot_dimension_numbers<[1], [0], [0], [1], [0, 0, 1, 1], [], []>} : vector<64x32xbf16>, vector<32x128xbf16>, vector<64x128xf32> -> vector<64x128xf32>
    %c0_3 = arith.constant 0 : index
    %c0_4 = arith.constant 0 : index
    %4 = vector.load %arg3[%c0_3, %c0_4] : memref<1x128xf32, #tpu.memory_space<vmem>>, vector<1x128xf32>
    %5 = vector.broadcast %4 : vector<1x128xf32> to vector<64x128xf32>
    %6 = arith.addf %3, %5 : vector<64x128xf32>
    %cst_5 = arith.constant 0.000000e+00 : f32
    %7 = vector.broadcast %cst_5 : f32 to vector<64x128xf32>
    %8 = arith.maximumf %6, %7 : vector<64x128xf32>
    %9 = arith.truncf %8 : vector<64x128xf32> to vector<64x128xbf16>
    %c0_6 = arith.constant 0 : index
    %c0_7 = arith.constant 0 : index
    %10 = vector.load %arg4[%c0_6, %c0_7] : memref<128x128xbf16, #tpu.memory_space<vmem>>, vector<128x128xbf16>
    %cst_8 = arith.constant dense<0.000000e+00> : vector<64x128xf32>
    %11 = tpu.matmul %9, %10, %cst_8 {dimension_numbers = #tpu.dot_dimension_numbers<[1], [0], [0], [1], [0, 0, 1, 1], [], []>} : vector<64x128xbf16>, vector<128x128xbf16>, vector<64x128xf32> -> vector<64x128xf32>
    %c0_9 = arith.constant 0 : index
    %c0_10 = arith.constant 0 : index
    %12 = vector.load %arg5[%c0_9, %c0_10] : memref<1x128xf32, #tpu.memory_space<vmem>>, vector<1x128xf32>
    %13 = vector.broadcast %12 : vector<1x128xf32> to vector<64x128xf32>
    %14 = arith.addf %11, %13 : vector<64x128xf32>
    %cst_11 = arith.constant 0.000000e+00 : f32
    %15 = vector.broadcast %cst_11 : f32 to vector<64x128xf32>
    %16 = arith.maximumf %14, %15 : vector<64x128xf32>
    %17 = arith.truncf %16 : vector<64x128xf32> to vector<64x128xbf16>
    %c0_12 = arith.constant 0 : index
    %c0_13 = arith.constant 0 : index
    %18 = vector.load %arg6[%c0_12, %c0_13] : memref<128x128xbf16, #tpu.memory_space<vmem>>, vector<128x128xbf16>
    %cst_14 = arith.constant dense<0.000000e+00> : vector<64x128xf32>
    %19 = tpu.matmul %17, %18, %cst_14 {dimension_numbers = #tpu.dot_dimension_numbers<[1], [0], [0], [1], [0, 0, 1, 1], [], []>} : vector<64x128xbf16>, vector<128x128xbf16>, vector<64x128xf32> -> vector<64x128xf32>
    %c0_15 = arith.constant 0 : index
    %c0_16 = arith.constant 0 : index
    %20 = vector.load %arg7[%c0_15, %c0_16] : memref<1x128xf32, #tpu.memory_space<vmem>>, vector<1x128xf32>
    %21 = vector.broadcast %20 : vector<1x128xf32> to vector<64x128xf32>
    %22 = arith.addf %19, %21 : vector<64x128xf32>
    %cst_17 = arith.constant 0.000000e+00 : f32
    %23 = vector.broadcast %cst_17 : f32 to vector<64x128xf32>
    %24 = arith.maximumf %22, %23 : vector<64x128xf32>
    %25 = arith.truncf %24 : vector<64x128xf32> to vector<64x128xbf16>
    %c0_18 = arith.constant 0 : index
    %c0_19 = arith.constant 0 : index
    %26 = vector.load %arg8[%c0_18, %c0_19] : memref<128x128xbf16, #tpu.memory_space<vmem>>, vector<128x128xbf16>
    %cst_20 = arith.constant dense<0.000000e+00> : vector<64x128xf32>
    %27 = tpu.matmul %25, %26, %cst_20 {dimension_numbers = #tpu.dot_dimension_numbers<[1], [0], [0], [1], [0, 0, 1, 1], [], []>} : vector<64x128xbf16>, vector<128x128xbf16>, vector<64x128xf32> -> vector<64x128xf32>
    %c0_21 = arith.constant 0 : index
    %c0_22 = arith.constant 0 : index
    %28 = vector.load %arg9[%c0_21, %c0_22] : memref<1x128xf32, #tpu.memory_space<vmem>>, vector<1x128xf32>
    %29 = vector.broadcast %28 : vector<1x128xf32> to vector<64x128xf32>
    %30 = arith.addf %27, %29 : vector<64x128xf32>
    %cst_23 = arith.constant 0.000000e+00 : f32
    %31 = vector.broadcast %cst_23 : f32 to vector<64x128xf32>
    %32 = arith.maximumf %30, %31 : vector<64x128xf32>
    %33 = arith.truncf %32 : vector<64x128xf32> to vector<64x128xbf16>
    %c0_24 = arith.constant 0 : index
    %c0_25 = arith.constant 0 : index
    %34 = vector.load %arg10[%c0_24, %c0_25] : memref<128x128xbf16, #tpu.memory_space<vmem>>, vector<128x128xbf16>
    %cst_26 = arith.constant dense<0.000000e+00> : vector<64x128xf32>
    %35 = tpu.matmul %33, %34, %cst_26 {dimension_numbers = #tpu.dot_dimension_numbers<[1], [0], [0], [1], [0, 0, 1, 1], [], []>} : vector<64x128xbf16>, vector<128x128xbf16>, vector<64x128xf32> -> vector<64x128xf32>
    %c0_27 = arith.constant 0 : index
    %c0_28 = arith.constant 0 : index
    %36 = vector.load %arg11[%c0_27, %c0_28] : memref<1x128xf32, #tpu.memory_space<vmem>>, vector<1x128xf32>
    %37 = vector.broadcast %36 : vector<1x128xf32> to vector<64x128xf32>
    %38 = arith.addf %35, %37 : vector<64x128xf32>
    %cst_29 = arith.constant 0.000000e+00 : f32
    %39 = vector.broadcast %cst_29 : f32 to vector<64x128xf32>
    %40 = arith.maximumf %38, %39 : vector<64x128xf32>
    %41 = arith.truncf %40 : vector<64x128xf32> to vector<64x128xbf16>
    %c0_30 = arith.constant 0 : index
    %c0_31 = arith.constant 0 : index
    %42 = vector.load %arg12[%c0_30, %c0_31] : memref<128x128xbf16, #tpu.memory_space<vmem>>, vector<128x128xbf16>
    %cst_32 = arith.constant dense<0.000000e+00> : vector<64x128xf32>
    %43 = tpu.matmul %41, %42, %cst_32 {dimension_numbers = #tpu.dot_dimension_numbers<[1], [0], [0], [1], [0, 0, 1, 1], [], []>} : vector<64x128xbf16>, vector<128x128xbf16>, vector<64x128xf32> -> vector<64x128xf32>
    %c0_33 = arith.constant 0 : index
    %c0_34 = arith.constant 0 : index
    %44 = vector.load %arg13[%c0_33, %c0_34] : memref<1x128xf32, #tpu.memory_space<vmem>>, vector<1x128xf32>
    %45 = vector.broadcast %44 : vector<1x128xf32> to vector<64x128xf32>
    %46 = arith.addf %43, %45 : vector<64x128xf32>
    %47 = arith.truncf %46 : vector<64x128xf32> to vector<64x128xbf16>
    %c0_35 = arith.constant 0 : index
    %c0_36 = arith.constant 0 : index
    %48 = vector.load %arg14[%c0_35, %c0_36] : memref<64x128xbf16, #tpu.memory_space<vmem>>, vector<64x128xbf16>
    tpu.vector_store %arg14[%c0_35, %c0_36], %47 {strides = array<i32>} : memref<64x128xbf16, #tpu.memory_space<vmem>>, vector<64x128xbf16>,
    return
  }
  func.func @transform_0(%arg0: i32) -> (i32, i32) {
    %c0_i32 = arith.constant 0 : i32
    %c0_i32_0 = arith.constant 0 : i32
    return %arg0, %c0_i32 : i32, i32
  }
  func.func @transform_1(%arg0: i32) -> (i32, i32) {
    %c0_i32 = arith.constant 0 : i32
    %c0_i32_0 = arith.constant 0 : i32
    %c0_i32_1 = arith.constant 0 : i32
    return %c0_i32, %c0_i32_0 : i32, i32
  }
  func.func @transform_2(%arg0: i32) -> (i32, i32) {
    %c0_i32 = arith.constant 0 : i32
    %c0_i32_0 = arith.constant 0 : i32
    %c0_i32_1 = arith.constant 0 : i32
    return %c0_i32, %c0_i32_0 : i32, i32
  }
  func.func @transform_3(%arg0: i32) -> (i32, i32) {
    %c0_i32 = arith.constant 0 : i32
    %c0_i32_0 = arith.constant 0 : i32
    %c0_i32_1 = arith.constant 0 : i32
    return %c0_i32, %c0_i32_0 : i32, i32
  }
  func.func @transform_4(%arg0: i32) -> (i32, i32) {
    %c0_i32 = arith.constant 0 : i32
    %c0_i32_0 = arith.constant 0 : i32
    %c0_i32_1 = arith.constant 0 : i32
    return %c0_i32, %c0_i32_0 : i32, i32
  }
  func.func @transform_5(%arg0: i32) -> (i32, i32) {
    %c0_i32 = arith.constant 0 : i32
    %c0_i32_0 = arith.constant 0 : i32
    %c0_i32_1 = arith.constant 0 : i32
    return %c0_i32, %c0_i32_0 : i32, i32
  }
  func.func @transform_6(%arg0: i32) -> (i32, i32) {
    %c0_i32 = arith.constant 0 : i32
    %c0_i32_0 = arith.constant 0 : i32
    %c0_i32_1 = arith.constant 0 : i32
    return %c0_i32, %c0_i32_0 : i32, i32
  }
  func.func @transform_7(%arg0: i32) -> (i32, i32) {
    %c0_i32 = arith.constant 0 : i32
    %c0_i32_0 = arith.constant 0 : i32
    %c0_i32_1 = arith.constant 0 : i32
    return %c0_i32, %c0_i32_0 : i32, i32
  }
  func.func @transform_8(%arg0: i32) -> (i32, i32) {
    %c0_i32 = arith.constant 0 : i32
    %c0_i32_0 = arith.constant 0 : i32
    %c0_i32_1 = arith.constant 0 : i32
    return %c0_i32, %c0_i32_0 : i32, i32
  }
  func.func @transform_9(%arg0: i32) -> (i32, i32) {
    %c0_i32 = arith.constant 0 : i32
    %c0_i32_0 = arith.constant 0 : i32
    %c0_i32_1 = arith.constant 0 : i32
    return %c0_i32, %c0_i32_0 : i32, i32
  }
  func.func @transform_10(%arg0: i32) -> (i32, i32) {
    %c0_i32 = arith.constant 0 : i32
    %c0_i32_0 = arith.constant 0 : i32
    %c0_i32_1 = arith.constant 0 : i32
    return %c0_i32, %c0_i32_0 : i32, i32
  }
  func.func @transform_11(%arg0: i32) -> (i32, i32) {
    %c0_i32 = arith.constant 0 : i32
    %c0_i32_0 = arith.constant 0 : i32
    %c0_i32_1 = arith.constant 0 : i32
    return %c0_i32, %c0_i32_0 : i32, i32
  }
  func.func @transform_12(%arg0: i32) -> (i32, i32) {
    %c0_i32 = arith.constant 0 : i32
    %c0_i32_0 = arith.constant 0 : i32
    %c0_i32_1 = arith.constant 0 : i32
    return %c0_i32, %c0_i32_0 : i32, i32
  }
  func.func @transform_13(%arg0: i32) -> (i32, i32) {
    %c0_i32 = arith.constant 0 : i32
    %c0_i32_0 = arith.constant 0 : i32
    return %arg0, %c0_i32 : i32, i32
  }
}

</mosaic_0001>

<bundles_post_ra>
// kernel: _bsnet_forward_impl.1
= control target key start
LH: loop header
LB: loop body
LE: loop exit
PB: predicated region body
PF: predicated region fallthrough
CT: control target
= control target key end

     0   :  { %vm80_vm0 = vcmask 261120   ;;  %s1527_s1 = inlined_call_operand.vmem [shape: bf16[32,128], index: 1, kind: input, shape index: {}]   ;;  %s1528_s0 = inlined_call_operand.vmem [shape: f32[64,32], index: 0, kind: input, shape index: {}]   ;;  %s1529_s3 = inlined_call_operand.vmem [shape: bf16[128,128], index: 3, kind: input, shape index: {}]   ;;  %s1530_s5 = inlined_call_operand.vmem [shape: bf16[128,128], index: 5, kind: input, shape index: {}]   ;;  %s1531_s2 = inlined_call_operand.vmem [shape: f32[1,128], index: 2, kind: input, shape index: {}]   ;;  %s1532_s7 = inlined_call_operand.vmem [shape: bf16[128,128], index: 7, kind: input, shape index: {}]   ;;  %s1533_s4 = inlined_call_operand.vmem [shape: f32[1,128], index: 4, kind: input, shape index: {}]   ;;  %s1534_s9 = inlined_call_operand.vmem [shape: bf16[128,128], index: 9, kind: input, shape index: {}]   ;;  %s1535_s6 = inlined_call_operand.vmem [shape: f32[1,128], index: 6, kind: input, shape index: {}]   ;;  %s1536_s11 = inlined_call_operand.vmem [shape: bf16[128,128], index: 11, kind: input, shape index: {}]   ;;  %s1537_s8 = inlined_call_operand.vmem [shape: f32[1,128], index: 8, kind: input, shape index: {}]   ;;  %s1538_s10 = inlined_call_operand.vmem [shape: f32[1,128], index: 10, kind: input, shape index: {}]   ;;  %s1539_s12 = inlined_call_operand.vmem [shape: f32[1,128], index: 12, kind: input, shape index: {}]   ;;  %s1540_s13 = inlined_call_operand.vmem [shape: bf16[64,128], index: 13, kind: output, shape index: {}]  }
   0x1   :  { %v1231_v0 = vld [vmem:[%s1527_s1] sm:$0xff]   ;;  %v1232_v1 = vld [vmem:[%s1527_s1 + $0x8] sm:$0xff]   ;;  %v47_v5 = vld [vmem:[%s1528_s0 + $0x10] sm:$0xff] }
   0x2   :  { %1099 = vmatprep.subr.bf16.mxu0 %v1231_v0  ;;  %v45_v2 = vld [vmem:[%s1528_s0] sm:$0xff]  ;;  %v46_v3 = vld [vmem:[%s1528_s0 + $0x8] sm:$0xff]  ;;  %v48_v6 = vld [vmem:[%s1528_s0 + $0x18] sm:$0xff] }
   0x3   :  { %1100 = vmatpush3.bf16.msra.mxu0 %v1231_v0  ;;  %v53_v4 = vpack.c.bf16 %v46_v3, %v45_v2  ;;  %v49_v7 = vld [vmem:[%s1528_s0 + $0x20] sm:$0xff]  ;;  %v50_v8 = vld [vmem:[%s1528_s0 + $0x28] sm:$0xff]  ;;  %v54_v10 = vpack.c.bf16 %v48_v6, %v47_v5  ;;  %v51_v13 = vld [vmem:[%s1528_s0 + $0x30] sm:$0xff] }
   0x4   :  { %1101 = vmatprep.subr.bf16.mxu0 %v1232_v1  ;;  %v1233_v9 = vld [vmem:[%s1529_s3] sm:$0xff]   ;;  %v1234_v11 = vld [vmem:[%s1529_s3 + $0x8] sm:$0xff]   ;;  %v55_v12 = vpack.c.bf16 %v50_v8, %v49_v7  ;;  %v1235_v14 = vld [vmem:[%s1529_s3 + $0x10] sm:$0xff]  }
   0x5   :  { %1103 = vmatprep.mubr.msk.bf16.mxu0 %vm80_vm0, %v53_v4  ;;  %1111 = vmatprep.subr.bf16.mxu1 %v1233_v9  ;;  %v52_v15 = vld [vmem:[%s1528_s0 + $0x38] sm:$0xff]  ;;  %v1237_v18 = vld [vmem:[%s1529_s3 + $0x20] sm:$0xff]   ;;  %v1238_v19 = vld [vmem:[%s1529_s3 + $0x28] sm:$0xff]  }
   0x6   :  { %1112 = vmatpush3.bf16.msra.mxu1 %v1233_v9  ;;  %v1236_v16 = vld [vmem:[%s1529_s3 + $0x18] sm:$0xff]   ;;  %v56_v17 = vpack.c.bf16 %v52_v15, %v51_v13  ;;  %v1239_v20 = vld [vmem:[%s1529_s3 + $0x30] sm:$0xff]   ;;  %v1241_v22 = vld [vmem:[%s1530_s5] sm:$0xff]  }
   0x7   :  { %1102 = vmatpush3.bf16.msra.mxu0 %v1232_v1  ;;  %1113 = vmatprep.subr.bf16.mxu1 %v1234_v11  ;;  %v1240_v21 = vld [vmem:[%s1529_s3 + $0x38] sm:$0xff]   ;;  %v1242_v23 = vld [vmem:[%s1530_s5 + $0x8] sm:$0xff]   ;;  %v1243_v24 = vld [vmem:[%s1530_s5 + $0x10] sm:$0xff]  }
   0x8   :  { %1135 = vmatprep.subr.bf16.mxu0 %v1241_v22  ;;  %v1244_v25 = vld [vmem:[%s1530_s5 + $0x18] sm:$0xff]   ;;  %v1245_v26 = vld [vmem:[%s1530_s5 + $0x20] sm:$0xff]   ;;  %v1246_v27 = vld [vmem:[%s1530_s5 + $0x28] sm:$0xff]  }
   0x9   :  { %v942_v28 = vld [vmem:[%s1531_s2] ss:$0 sm:$0xff]  ;;  %v1247_v57 = vld [vmem:[%s1530_s5 + $0x30] sm:$0xff]   ;;  %v1248_v58 = vld [vmem:[%s1530_s5 + $0x38] sm:$0xff]  }
   0xa   :  { %1104 = vmatmul.mubr.msk.bf16.vlgmr.msra.gmra.mrb[0].mxu0 %vm80_vm0, %v54_v10  ;;  %1114 = vmatpush3.bf16.msra.mxu1 %v1234_v11  ;;  %v1249_v59 = vld [vmem:[%s1532_s7] sm:$0xff]   ;;  %v1250_v60 = vld [vmem:[%s1532_s7 + $0x8] sm:$0xff]   ;;  %v1251_v61 = vld [vmem:[%s1532_s7 + $0x10] sm:$0xff]  }
   0xb   :  { %1107 = vmatprep.mubr.msk.bf16.mxu0 %vm80_vm0, %v55_v12  ;;  %1115 = vmatprep.subr.bf16.mxu1 %v1235_v14  ;;  %v1252_v62 = vld [vmem:[%s1532_s7 + $0x18] sm:$0xff]   ;;  %v1253_v63 = vld [vmem:[%s1532_s7 + $0x20] sm:$0xff]   ;;  %v1254_v0 = vld [vmem:[%s1532_s7 + $0x28] sm:$0xff]  }
   0xc   :  { %1136 = vmatpush3.bf16.msra.mxu0 %v1241_v22  ;;  %v949_v1 = vld [vmem:[%s1533_s4] ss:$0 sm:$0xff] }
   0xd   :  { %1137 = vmatprep.subr.bf16.mxu0 %v1242_v23 }
   0xe   :  { %1116 = vmatpush3.bf16.msra.mxu1 %v1235_v14 }
   0xf   :  { %1117 = vmatprep.subr.bf16.mxu1 %v1236_v16 }
  0x10   :  { %1138 = vmatpush3.bf16.msra.mxu0 %v1242_v23 }
  0x11   :  { %1139 = vmatprep.subr.bf16.mxu0 %v1243_v24 }
  0x12   :  { %1108 = vmatmul.mubr.msk.bf16.gmra.mrb[4].mxu0 %vm80_vm0, %v56_v17  ;;  %1118 = vmatpush3.bf16.msra.mxu1 %v1236_v16 }
  0x13   :  { %1119 = vmatprep.subr.bf16.mxu1 %v1237_v18 }
  0x14   :  { %1140 = vmatpush3.bf16.msra.mxu0 %v1243_v24 }
  0x15   :  { %1141 = vmatprep.subr.bf16.mxu0 %v1244_v25 }
  0x16   :  { %1120 = vmatpush3.bf16.msra.mxu1 %v1237_v18 }
  0x17   :  { %1121 = vmatprep.subr.bf16.mxu1 %v1238_v19 }
  0x18   :  { %1142 = vmatpush3.bf16.msra.mxu0 %v1244_v25 }
  0x19   :  { %1143 = vmatprep.subr.bf16.mxu0 %v1245_v26 }
  0x1a   :  { %1122 = vmatpush3.bf16.msra.mxu1 %v1238_v19 }
  0x1b   :  { %1123 = vmatprep.subr.bf16.mxu1 %v1239_v20 }
  0x1c   :  { %1144 = vmatpush3.bf16.msra.mxu0 %v1245_v26 }
  0x1d   :  { %1145 = vmatprep.subr.bf16.mxu0 %v1246_v27 }
  0x1e   :  { %1124 = vmatpush3.bf16.msra.mxu1 %v1239_v20 }
  0x1f   :  { %1125 = vmatprep.subr.bf16.mxu1 %v1240_v21 }
  0x20   :  { %1146 = vmatpush3.bf16.msra.mxu0 %v1246_v27 }
  0x21   :  { %1147 = vmatprep.subr.bf16.mxu0 %v1247_v57 }
  0x22   :  { %1126 = vmatpush3.bf16.msra.mxu1 %v1240_v21 }
  0x23   :  { %1159 = vmatprep.subr.bf16.mxu1 %v1249_v59 }
  0x24   :  { %1148 = vmatpush3.bf16.msra.mxu0 %v1247_v57 }
  0x25   :  { %1149 = vmatprep.subr.bf16.mxu0 %v1248_v58 }
  0x28   :  { %1150 = vmatpush3.bf16.msra.mxu0 %v1248_v58 }
  0xdd   :  { %v1105_v29 = vpop.f32.mrb[0].mxu0 }
  0xde   :  { %v136_v30 = vadd.f32 %v1105_v29, %v942_v28  ;;  %v127_v31 = vpop.f32.mrb[1].mxu0 }
  0xdf   :  { %v128_v32 = vadd.f32 %v942_v28, %v127_v31  ;;  %v1106_v33 = vpop.f32.mrb[2].mxu0  ;;  %v1256_v31 = vld [vmem:[%s1532_s7 + $0x38] sm:$0xff]  }
  0xe0   :  { %v139_v34 = vadd.f32 %v1106_v33, %v942_v28  ;;  %v130_v35 = vpop.f32.mrb[3].mxu0  ;;  %v160_v37 = vmax.f32 %v136_v30, 0.0  ;;  %v1255_v30 = vld [vmem:[%s1532_s7 + $0x30] sm:$0xff]   ;;  %v1258_v33 = vld [vmem:[%s1534_s9 + $0x8] sm:$0xff]  }
  0xe1   :  { %v131_v36 = vadd.f32 %v942_v28, %v130_v35  ;;  %v158_v39 = vmax.f32 %v128_v32, 0.0  ;;  %v1257_v32 = vld [vmem:[%s1534_s9] sm:$0xff]   ;;  %v1260_v35 = vld [vmem:[%s1534_s9 + $0x18] sm:$0xff]  }
  0xe2   :  { %v161_v38 = vmax.f32 %v139_v34, 0.0  ;;  %1183 = vmatprep.subr.bf16.mxu0 %v1257_v32  ;;  %v1259_v34 = vld [vmem:[%s1534_s9 + $0x10] sm:$0xff]  }
  0xe3   :  { %v159_v40 = vmax.f32 %v131_v36, 0.0  ;;  %v1261_v36 = vld [vmem:[%s1534_s9 + $0x20] sm:$0xff]  }
  0xe4   :  { %v167_v41 = vpack.c.bf16 %v161_v38, %v160_v37  ;;  %v1262_v37 = vld [vmem:[%s1534_s9 + $0x28] sm:$0xff]   ;;  %v958_v38 = vld [vmem:[%s1535_s6] ss:$0 sm:$0xff] }
  0xe5   :  { %v1109_v42 = vpop.f32.mrb[4].mxu0  ;;  %v166_v43 = vpack.c.bf16 %v159_v40, %v158_v39 }
  0xe6   :  { %v152_v44 = vadd.f32 %v1109_v42, %v942_v28  ;;  %v143_v45 = vpop.f32.mrb[5].mxu0 }
  0xe7   :  { %v144_v46 = vadd.f32 %v942_v28, %v143_v45  ;;  %v1110_v47 = vpop.f32.mrb[6].mxu0  ;;  %1127 = vmatprep.mubr.bf16.mxu1 %v166_v43 }
  0xe8   :  { %v155_v48 = vadd.f32 %v1110_v47, %v942_v28  ;;  %v146_v49 = vpop.f32.mrb[7].mxu0  ;;  %1128 = vmatmul.mubr.bf16.vlgmr.msra.gmra.mrb[0].mxu1 %v167_v41  ;;  %v164_v51 = vmax.f32 %v152_v44, 0.0 }
  0xe9   :  { %v147_v50 = vadd.f32 %v942_v28, %v146_v49  ;;  %v162_v53 = vmax.f32 %v144_v46, 0.0  ;;  %1160 = vmatpush3.bf16.msra.mxu1 %v1249_v59 }
  0xea   :  { %v165_v52 = vmax.f32 %v155_v48, 0.0  ;;  %1161 = vmatprep.subr.bf16.mxu1 %v1250_v60 }
  0xeb   :  { %v163_v54 = vmax.f32 %v147_v50, 0.0 }
  0xec   :  { %v169_v55 = vpack.c.bf16 %v165_v52, %v164_v51 }
  0xed   :  { %v168_v56 = vpack.c.bf16 %v163_v54, %v162_v53  ;;  %1162 = vmatpush3.bf16.msra.mxu1 %v1250_v60 }
  0xee   :  { %1163 = vmatprep.subr.bf16.mxu1 %v1251_v61 }
  0xef   :  { %1131 = vmatprep.mubr.bf16.mxu1 %v168_v56 }
  0xf0   :  { %1132 = vmatmul.mubr.bf16.gmra.mrb[4].mxu1 %v169_v55 }
  0xf1   :  { %1164 = vmatpush3.bf16.msra.mxu1 %v1251_v61 }
  0xf2   :  { %1165 = vmatprep.subr.bf16.mxu1 %v1252_v62 }
  0xf5   :  { %1166 = vmatpush3.bf16.msra.mxu1 %v1252_v62 }
  0xf6   :  { %1167 = vmatprep.subr.bf16.mxu1 %v1253_v63 }
  0xf9   :  { %1168 = vmatpush3.bf16.msra.mxu1 %v1253_v63 }
  0xfa   :  { %1169 = vmatprep.subr.bf16.mxu1 %v1254_v0 }
  0xfd   :  { %1170 = vmatpush3.bf16.msra.mxu1 %v1254_v0 }
  0xfe   :  { %1171 = vmatprep.subr.bf16.mxu1 %v1255_v30 }
 0x101   :  { %1172 = vmatpush3.bf16.msra.mxu1 %v1255_v30 }
 0x102   :  { %1173 = vmatprep.subr.bf16.mxu1 %v1256_v31 }
 0x105   :  { %1174 = vmatpush3.bf16.msra.mxu1 %v1256_v31 }
 0x1bb   :  { %v1129_v2 = vpop.f32.mrb[0].mxu1 }
 0x1bc   :  { %v284_v3 = vadd.f32 %v1129_v2, %v949_v1  ;;  %v275_v4 = vpop.f32.mrb[1].mxu1 }
 0x1bd   :  { %v276_v5 = vadd.f32 %v949_v1, %v275_v4  ;;  %v1130_v6 = vpop.f32.mrb[2].mxu1  ;;  %v1264_v4 = vld [vmem:[%s1534_s9 + $0x38] sm:$0xff]  }
 0x1be   :  { %v287_v7 = vadd.f32 %v1130_v6, %v949_v1  ;;  %v278_v8 = vpop.f32.mrb[3].mxu1  ;;  %v308_v10 = vmax.f32 %v284_v3, 0.0  ;;  %v1263_v3 = vld [vmem:[%s1534_s9 + $0x30] sm:$0xff]   ;;  %v1266_v6 = vld [vmem:[%s1536_s11 + $0x8] sm:$0xff]  }
 0x1bf   :  { %v279_v9 = vadd.f32 %v949_v1, %v278_v8  ;;  %v306_v12 = vmax.f32 %v276_v5, 0.0  ;;  %v1265_v5 = vld [vmem:[%s1536_s11] sm:$0xff]   ;;  %v1268_v8 = vld [vmem:[%s1536_s11 + $0x18] sm:$0xff]  }
 0x1c0   :  { %v309_v11 = vmax.f32 %v287_v7, 0.0  ;;  %1207 = vmatprep.subr.bf16.mxu1 %v1265_v5  ;;  %v1267_v7 = vld [vmem:[%s1536_s11 + $0x10] sm:$0xff]  }
 0x1c1   :  { %v307_v13 = vmax.f32 %v279_v9, 0.0  ;;  %v1269_v9 = vld [vmem:[%s1536_s11 + $0x20] sm:$0xff]  }
 0x1c2   :  { %v315_v14 = vpack.c.bf16 %v309_v11, %v308_v10  ;;  %v1270_v10 = vld [vmem:[%s1536_s11 + $0x28] sm:$0xff]   ;;  %v967_v11 = vld [vmem:[%s1537_s8] ss:$0 sm:$0xff] }
 0x1c3   :  { %v314_v15 = vpack.c.bf16 %v307_v13, %v306_v12  ;;  %v1133_v16 = vpop.f32.mrb[4].mxu1 }
 0x1c4   :  { %v300_v17 = vadd.f32 %v1133_v16, %v949_v1  ;;  %v291_v18 = vpop.f32.mrb[5].mxu1 }
 0x1c5   :  { %v292_v19 = vadd.f32 %v949_v1, %v291_v18  ;;  %v1134_v20 = vpop.f32.mrb[6].mxu1  ;;  %1151 = vmatprep.mubr.bf16.mxu0 %v314_v15 }
 0x1c6   :  { %v303_v21 = vadd.f32 %v1134_v20, %v949_v1  ;;  %v294_v22 = vpop.f32.mrb[7].mxu1  ;;  %1152 = vmatmul.mubr.bf16.vlgmr.msra.gmra.mrb[8].mxu0 %v315_v14  ;;  %v312_v24 = vmax.f32 %v300_v17, 0.0 }
 0x1c7   :  { %v295_v23 = vadd.f32 %v949_v1, %v294_v22  ;;  %v310_v26 = vmax.f32 %v292_v19, 0.0  ;;  %1184 = vmatpush3.bf16.msra.mxu0 %v1257_v32 }
 0x1c8   :  { %v313_v25 = vmax.f32 %v303_v21, 0.0  ;;  %1185 = vmatprep.subr.bf16.mxu0 %v1258_v33 }
 0x1c9   :  { %v311_v27 = vmax.f32 %v295_v23, 0.0 }
 0x1ca   :  { %v317_v28 = vpack.c.bf16 %v313_v25, %v312_v24 }
 0x1cb   :  { %v316_v29 = vpack.c.bf16 %v311_v27, %v310_v26  ;;  %1186 = vmatpush3.bf16.msra.mxu0 %v1258_v33 }
 0x1cc   :  { %1187 = vmatprep.subr.bf16.mxu0 %v1259_v34 }
 0x1cd   :  { %1155 = vmatprep.mubr.bf16.mxu0 %v316_v29 }
 0x1ce   :  { %1156 = vmatmul.mubr.bf16.gmra.mrb[12].mxu0 %v317_v28 }
 0x1cf   :  { %1188 = vmatpush3.bf16.msra.mxu0 %v1259_v34 }
 0x1d0   :  { %1189 = vmatprep.subr.bf16.mxu0 %v1260_v35 }
 0x1d3   :  { %1190 = vmatpush3.bf16.msra.mxu0 %v1260_v35 }
 0x1d4   :  { %1191 = vmatprep.subr.bf16.mxu0 %v1261_v36 }
 0x1d7   :  { %1192 = vmatpush3.bf16.msra.mxu0 %v1261_v36 }
 0x1d8   :  { %1193 = vmatprep.subr.bf16.mxu0 %v1262_v37 }
 0x1db   :  { %1194 = vmatpush3.bf16.msra.mxu0 %v1262_v37 }
 0x1dc   :  { %1195 = vmatprep.subr.bf16.mxu0 %v1263_v3 }
 0x1df   :  { %1196 = vmatpush3.bf16.msra.mxu0 %v1263_v3 }
 0x1e0   :  { %1197 = vmatprep.subr.bf16.mxu0 %v1264_v4 }
 0x1e3   :  { %1198 = vmatpush3.bf16.msra.mxu0 %v1264_v4 }
 0x299   :  { %v1153_v39 = vpop.f32.mrb[8].mxu0 }
 0x29a   :  { %v432_v40 = vadd.f32 %v1153_v39, %v958_v38  ;;  %v423_v41 = vpop.f32.mrb[9].mxu0 }
 0x29b   :  { %v424_v42 = vadd.f32 %v958_v38, %v423_v41  ;;  %v1154_v43 = vpop.f32.mrb[10].mxu0  ;;  %v1272_v41 = vld [vmem:[%s1536_s11 + $0x38] sm:$0xff]  }
 0x29c   :  { %v435_v44 = vadd.f32 %v1154_v43, %v958_v38  ;;  %v426_v45 = vpop.f32.mrb[11].mxu0  ;;  %v456_v47 = vmax.f32 %v432_v40, 0.0  ;;  %v1271_v40 = vld [vmem:[%s1536_s11 + $0x30] sm:$0xff]  }
 0x29d   :  { %v427_v46 = vadd.f32 %v958_v38, %v426_v45  ;;  %v454_v49 = vmax.f32 %v424_v42, 0.0  ;;  %v976_v42 = vld [vmem:[%s1538_s10] ss:$0 sm:$0xff] }
 0x29e   :  { %v457_v48 = vmax.f32 %v435_v44, 0.0 }
 0x29f   :  { %v455_v50 = vmax.f32 %v427_v46, 0.0 }
 0x2a0   :  { %v463_v51 = vpack.c.bf16 %v457_v48, %v456_v47 }
 0x2a1   :  { %v462_v52 = vpack.c.bf16 %v455_v50, %v454_v49  ;;  %v1157_v53 = vpop.f32.mrb[12].mxu0 }
 0x2a2   :  { %v448_v54 = vadd.f32 %v1157_v53, %v958_v38  ;;  %v439_v55 = vpop.f32.mrb[13].mxu0 }
 0x2a3   :  { %v440_v56 = vadd.f32 %v958_v38, %v439_v55  ;;  %v1158_v57 = vpop.f32.mrb[14].mxu0  ;;  %1175 = vmatprep.mubr.bf16.mxu1 %v462_v52 }
 0x2a4   :  { %v451_v58 = vadd.f32 %v1158_v57, %v958_v38  ;;  %v442_v59 = vpop.f32.mrb[15].mxu0  ;;  %1176 = vmatmul.mubr.bf16.vlgmr.msra.gmra.mrb[8].mxu1 %v463_v51  ;;  %v460_v61 = vmax.f32 %v448_v54, 0.0 }
 0x2a5   :  { %v443_v60 = vadd.f32 %v958_v38, %v442_v59  ;;  %v458_v63 = vmax.f32 %v440_v56, 0.0  ;;  %1208 = vmatpush3.bf16.msra.mxu1 %v1265_v5 }
 0x2a6   :  { %v461_v62 = vmax.f32 %v451_v58, 0.0  ;;  %1209 = vmatprep.subr.bf16.mxu1 %v1266_v6 }
 0x2a7   :  { %v459_v0 = vmax.f32 %v443_v60, 0.0 }
 0x2a8   :  { %v465_v1 = vpack.c.bf16 %v461_v62, %v460_v61 }
 0x2a9   :  { %v464_v2 = vpack.c.bf16 %v459_v0, %v458_v63  ;;  %1210 = vmatpush3.bf16.msra.mxu1 %v1266_v6 }
 0x2aa   :  { %1211 = vmatprep.subr.bf16.mxu1 %v1267_v7 }
 0x2ab   :  { %1179 = vmatprep.mubr.bf16.mxu1 %v464_v2 }
 0x2ac   :  { %1180 = vmatmul.mubr.bf16.gmra.mrb[12].mxu1 %v465_v1 }
 0x2ad   :  { %1212 = vmatpush3.bf16.msra.mxu1 %v1267_v7 }
 0x2ae   :  { %1213 = vmatprep.subr.bf16.mxu1 %v1268_v8 }
 0x2b1   :  { %1214 = vmatpush3.bf16.msra.mxu1 %v1268_v8  ;;  %v985_v8 = vld [vmem:[%s1539_s12] ss:$0 sm:$0xff] }
 0x2b2   :  { %1215 = vmatprep.subr.bf16.mxu1 %v1269_v9 }
 0x2b5   :  { %1216 = vmatpush3.bf16.msra.mxu1 %v1269_v9 }
 0x2b6   :  { %1217 = vmatprep.subr.bf16.mxu1 %v1270_v10 }
 0x2b9   :  { %1218 = vmatpush3.bf16.msra.mxu1 %v1270_v10 }
 0x2ba   :  { %1219 = vmatprep.subr.bf16.mxu1 %v1271_v40 }
 0x2bd   :  { %1220 = vmatpush3.bf16.msra.mxu1 %v1271_v40 }
 0x2be   :  { %1221 = vmatprep.subr.bf16.mxu1 %v1272_v41 }
 0x2c1   :  { %1222 = vmatpush3.bf16.msra.mxu1 %v1272_v41 }
 0x377   :  { %v1177_v12 = vpop.f32.mrb[8].mxu1 }
 0x378   :  { %v580_v13 = vadd.f32 %v1177_v12, %v967_v11  ;;  %v571_v14 = vpop.f32.mrb[9].mxu1 }
 0x379   :  { %v572_v15 = vadd.f32 %v967_v11, %v571_v14  ;;  %v1178_v16 = vpop.f32.mrb[10].mxu1 }
 0x37a   :  { %v583_v17 = vadd.f32 %v1178_v16, %v967_v11  ;;  %v574_v18 = vpop.f32.mrb[11].mxu1  ;;  %v604_v20 = vmax.f32 %v580_v13, 0.0 }
 0x37b   :  { %v575_v19 = vadd.f32 %v967_v11, %v574_v18  ;;  %v602_v22 = vmax.f32 %v572_v15, 0.0 }
 0x37c   :  { %v605_v21 = vmax.f32 %v583_v17, 0.0 }
 0x37d   :  { %v603_v23 = vmax.f32 %v575_v19, 0.0 }
 0x37e   :  { %v611_v24 = vpack.c.bf16 %v605_v21, %v604_v20 }
 0x37f   :  { %v610_v25 = vpack.c.bf16 %v603_v23, %v602_v22  ;;  %v1181_v26 = vpop.f32.mrb[12].mxu1 }
 0x380   :  { %v596_v27 = vadd.f32 %v1181_v26, %v967_v11  ;;  %v587_v28 = vpop.f32.mrb[13].mxu1 }
 0x381   :  { %v588_v29 = vadd.f32 %v967_v11, %v587_v28  ;;  %v1182_v30 = vpop.f32.mrb[14].mxu1  ;;  %1199 = vmatprep.mubr.bf16.mxu0 %v610_v25 }
 0x382   :  { %v599_v31 = vadd.f32 %v1182_v30, %v967_v11  ;;  %v590_v32 = vpop.f32.mrb[15].mxu1  ;;  %1200 = vmatmul.mubr.bf16.vlgmr.msra.gmra.mrb[16].mxu0 %v611_v24  ;;  %v608_v34 = vmax.f32 %v596_v27, 0.0 }
 0x383   :  { %v591_v33 = vadd.f32 %v967_v11, %v590_v32  ;;  %v606_v36 = vmax.f32 %v588_v29, 0.0 }
 0x384   :  { %v609_v35 = vmax.f32 %v599_v31, 0.0 }
 0x385   :  { %v607_v37 = vmax.f32 %v591_v33, 0.0 }
 0x386   :  { %v613_v38 = vpack.c.bf16 %v609_v35, %v608_v34 }
 0x387   :  { %v612_v39 = vpack.c.bf16 %v607_v37, %v606_v36 }
 0x389   :  { %1203 = vmatprep.mubr.bf16.mxu0 %v612_v39 }
 0x38a   :  { %1204 = vmatmul.mubr.bf16.gmra.mrb[20].mxu0 %v613_v38 }
 0x455   :  { %v1201_v43 = vpop.f32.mrb[16].mxu0 }
 0x456   :  { %v728_v44 = vadd.f32 %v1201_v43, %v976_v42  ;;  %v719_v45 = vpop.f32.mrb[17].mxu0 }
 0x457   :  { %v720_v46 = vadd.f32 %v976_v42, %v719_v45  ;;  %v1202_v47 = vpop.f32.mrb[18].mxu0 }
 0x458   :  { %v731_v48 = vadd.f32 %v1202_v47, %v976_v42  ;;  %v722_v49 = vpop.f32.mrb[19].mxu0  ;;  %v752_v51 = vmax.f32 %v728_v44, 0.0 }
 0x459   :  { %v723_v50 = vadd.f32 %v976_v42, %v722_v49  ;;  %v750_v53 = vmax.f32 %v720_v46, 0.0 }
 0x45a   :  { %v753_v52 = vmax.f32 %v731_v48, 0.0 }
 0x45b   :  { %v751_v54 = vmax.f32 %v723_v50, 0.0 }
 0x45c   :  { %v759_v55 = vpack.c.bf16 %v753_v52, %v752_v51 }
 0x45d   :  { %v758_v56 = vpack.c.bf16 %v751_v54, %v750_v53  ;;  %v1205_v57 = vpop.f32.mrb[20].mxu0 }
 0x45e   :  { %v744_v58 = vadd.f32 %v1205_v57, %v976_v42  ;;  %v735_v59 = vpop.f32.mrb[21].mxu0 }
 0x45f   :  { %v736_v60 = vadd.f32 %v976_v42, %v735_v59  ;;  %v1206_v61 = vpop.f32.mrb[22].mxu0  ;;  %1223 = vmatprep.mubr.bf16.mxu1 %v758_v56 }
 0x460   :  { %v747_v62 = vadd.f32 %v1206_v61, %v976_v42  ;;  %v738_v63 = vpop.f32.mrb[23].mxu0  ;;  %1224 = vmatmul.mubr.bf16.vlgmr.msra.gmra.mrb[16].mxu1 %v759_v55  ;;  %v756_v1 = vmax.f32 %v744_v58, 0.0 }
 0x461   :  { %v739_v0 = vadd.f32 %v976_v42, %v738_v63  ;;  %v754_v3 = vmax.f32 %v736_v60, 0.0 }
 0x462   :  { %v757_v2 = vmax.f32 %v747_v62, 0.0 }
 0x463   :  { %v755_v4 = vmax.f32 %v739_v0, 0.0 }
 0x464   :  { %v761_v5 = vpack.c.bf16 %v757_v2, %v756_v1 }
 0x465   :  { %v760_v6 = vpack.c.bf16 %v755_v4, %v754_v3 }
 0x467   :  { %1227 = vmatprep.mubr.bf16.mxu1 %v760_v6 }
 0x468   :  { %1228 = vmatmul.mubr.bf16.gmra.mrb[20].mxu1 %v761_v5 }
 0x533   :  { %v1225_v7 = vpop.f32.mrb[16].mxu1 }
 0x534   :  { %v867_v9 = vpop.f32.mrb[17].mxu1  ;;  %v876_v11 = vadd.f32 %v1225_v7, %v985_v8 }
 0x535   :  { %v1226_v10 = vpop.f32.mrb[18].mxu1  ;;  %v868_v14 = vadd.f32 %v985_v8, %v867_v9 }
 0x536   :  { %v879_v12 = vadd.f32 %v1226_v10, %v985_v8  ;;  %v870_v13 = vpop.f32.mrb[19].mxu1 }
 0x537   :  { %v871_v15 = vadd.f32 %v985_v8, %v870_v13 }
 0x538   :  { %v1018_v16 = vpack.c.bf16 %v879_v12, %v876_v11 }
 0x539   :  { %v1013_v17 = vpack.c.bf16 %v871_v15, %v868_v14 }
 0x53a   :  { %1030 = vst [vmem:[%s1540_s13 + $0x8] sm:$0xff] %v1018_v16  }
 0x53b   :  { %1014 = vst [vmem:[%s1540_s13] sm:$0xff] %v1013_v17   ;;  %v1229_v18 = vpop.f32.mrb[20].mxu1 }
 0x53c   :  { %v883_v19 = vpop.f32.mrb[21].mxu1  ;;  %v892_v21 = vadd.f32 %v1229_v18, %v985_v8 }
 0x53d   :  { %v1230_v20 = vpop.f32.mrb[22].mxu1  ;;  %v884_v24 = vadd.f32 %v985_v8, %v883_v19 }
 0x53e   :  { %v895_v22 = vadd.f32 %v1230_v20, %v985_v8  ;;  %v886_v23 = vpop.f32.mrb[23].mxu1 }
 0x53f   :  { %v887_v25 = vadd.f32 %v985_v8, %v886_v23 }
 0x540   :  { %v1028_v26 = vpack.c.bf16 %v895_v22, %v892_v21 }
 0x541   :  { %v1023_v27 = vpack.c.bf16 %v887_v25, %v884_v24 }
 0x542   :  { %1032 = vst [vmem:[%s1540_s13 + $0x18] sm:$0xff] %v1028_v26  }
 0x543   :  { %1031 = vst [vmem:[%s1540_s13 + $0x10] sm:$0xff] %v1023_v27  }

</bundles_post_ra>
